<compile_context>
chip_gen: v7x
topology: tpu7x:2x2x1
jax: 0.10.0
libtpu: 0.0.40
codegen_flags: <defaults>
</compile_context>

<pallas_src>
import jax
import jax.numpy as jnp
from jax.experimental import pallas as pl
from jax.experimental.pallas import tpu as pltpu

# dtype fed to the MXU. bf16 operands with f32 accumulation run the MXU at
# full rate on v5e/v6e/v7x; elementwise math stays f32 (v5e VPU has no bf16).
MXU_DTYPE = jnp.bfloat16


def _softmax(x, axis):
    m = jnp.max(x, axis=axis, keepdims=True)
    e = jnp.exp(x - m)
    return e / jnp.sum(e, axis=axis, keepdims=True)


def attention_kernel(xc_ref, xq_ref, wsim_ref, wproj_ref, bproj_ref,
                     out_ref, feat_ref):
    # xc_ref  : (Bt*C, E)   contexts for Bt batch elements, rows packed b-major
    # xq_ref  : (Bt, Q, E)  questions
    # wsim_ref: (3, E)      rows [w_c, w_q, w_mul] of similarity Linear(3E, 1)
    # wproj_ref:(4E, OUT)   fused projection weight (order [c, c2q, c*c2q, c*q2c])
    # bproj_ref:(1, OUT)
    # out_ref : (Bt*C, OUT)
    # feat_ref: (Bt*C, 4E)  VMEM scratch holding the concatenated features
    Bt, Q, E = xq_ref.shape
    C = xc_ref.shape[0] // Bt

    w_c = wsim_ref[0:1, :]                      # (1, E)
    w_q = wsim_ref[1:2, :]
    w_m = wsim_ref[2:3, :]

    # Per-batch score / dual-softmax / attention path. Bt is small and static,
    # so a static unroll keeps every op a simple 2-D VPU/MXU pattern.
    for b in range(Bt):
        r0, r1 = b * C, (b + 1) * C
        xc = xc_ref[r0:r1, :]                   # (C, E) f32
        xq = xq_ref[b]                          # (Q, E) f32

        # similarity logits: S[c,q] = xc[c].w_c + xq[q].w_q + sum_e xc*xq*w_m
        term_c = jnp.sum(xc * w_c, axis=-1, keepdims=True)       # (C, 1)
        term_q = jnp.sum(xq * w_q, axis=-1, keepdims=True)       # (Q, 1)
        xcm = xc * w_m                                            # (C, E)
        S = term_c + term_q.T + jnp.dot(
            xcm.astype(MXU_DTYPE), xq.T.astype(MXU_DTYPE),
            preferred_element_type=jnp.float32)                   # (C, Q)

        S_row = _softmax(S, axis=-1)            # softmax over questions (dim=-1)
        S_colT = _softmax(S, axis=0).T          # softmax over contexts, transposed -> (Q, C)

        sr_b = S_row.astype(MXU_DTYPE)
        xq_b = xq.astype(MXU_DTYPE)
        xc_b = xc.astype(MXU_DTYPE)

        # context-to-question attention: (C,Q) @ (Q,E)
        c2q = jnp.dot(sr_b, xq_b, preferred_element_type=jnp.float32)      # (C, E)
        # question-to-context attention, reassociated:
        #   (S_row @ S_col^T) @ xc == S_row @ (S_col^T @ xc)  (no C x C temp)
        t = jnp.dot(S_colT.astype(MXU_DTYPE), xc_b,
                    preferred_element_type=jnp.float32)                     # (Q, E)
        q2c = jnp.dot(sr_b, t.astype(MXU_DTYPE),
                      preferred_element_type=jnp.float32)                   # (C, E)

        # Assemble cat([xc, c2q, xc*c2q, xc*q2c], -1) in the scratch slab.
        feat_ref[r0:r1, 0:E] = xc
        feat_ref[r0:r1, E:2 * E] = c2q
        feat_ref[r0:r1, 2 * E:3 * E] = xc * c2q
        feat_ref[r0:r1, 3 * E:4 * E] = xc * q2c

    # Single fused projection: (Bt*C, 4E) @ (4E, OUT), K = 128, shared weight.
    out = jnp.dot(feat_ref[...].astype(MXU_DTYPE),
                  wproj_ref[...].astype(MXU_DTYPE),
                  preferred_element_type=jnp.float32) + bproj_ref[...]
    out_ref[...] = out.astype(out_ref.dtype)


def _pick_block_batch(B, C, max_rows=256):
    """Batch elements packed per grid step: amortizes ~0.35us/step pipeline
    overhead and fills the M dim of the fused projection matmul."""
    if C % 8 != 0:
        return B            # single resident step: block == full array (always legal)
    best = 1
    for bt in range(1, B + 1):
        if B % bt == 0 and bt * C <= max(max_rows, C):
            best = bt
    return best


@jax.jit
def attention_pallas(x_contexts, x_questions, w_sim, w_proj, b_proj):
    B, C, E = x_contexts.shape
    _, Q, _ = x_questions.shape
    OUT = w_proj.shape[-1]

    Bt = _pick_block_batch(B, C)
    steps = B // Bt

    xc2d = x_contexts.reshape(B * C, E)         # rows packed b-major
    wsim3 = w_sim.reshape(3, E)                 # rows: [w_c, w_q, w_mul]
    bproj2 = b_proj.reshape(1, OUT)

    flops = B * (2 * C * Q * E                  # similarity scores
                 + 2 * C * Q * E                # c2q
                 + 2 * Q * C * E                # S_col^T @ xc
                 + 2 * C * Q * E                # q2c
                 + 2 * C * 4 * E * OUT)         # fused projection
    cost = pl.CostEstimate(
        flops=flops,
        transcendentals=2 * B * C * Q,          # two softmaxes
        bytes_accessed=4 * (B * C * E + B * Q * E + 3 * E
                            + 4 * E * OUT + OUT + B * C * OUT))

    out2d = pl.pallas_call(
        attention_kernel,
        out_shape=jax.ShapeDtypeStruct((B * C, OUT), jnp.float32),
        grid_spec=pltpu.PrefetchScalarGridSpec(
            num_scalar_prefetch=0,
            grid=(steps,),
            in_specs=[
                pl.BlockSpec((Bt * C, E), lambda i: (i, 0)),
                pl.BlockSpec((Bt, Q, E), lambda i: (i, 0, 0)),
                pl.BlockSpec((3, E), lambda i: (0, 0)),          # resident weights
                pl.BlockSpec((4 * E, OUT), lambda i: (0, 0)),
                pl.BlockSpec((1, OUT), lambda i: (0, 0)),
            ],
            out_specs=pl.BlockSpec((Bt * C, OUT), lambda i: (i, 0)),
            scratch_shapes=[pltpu.VMEM((Bt * C, 4 * E), jnp.float32)],
        ),
        compiler_params=pltpu.CompilerParams(
            # parallel batch axis -> sharded across the 2 TCs on v7x when steps >= 2
            dimension_semantics=("parallel",)),
        cost_estimate=cost,
    )(xc2d, x_questions, wsim3, w_proj, bproj2)

    return out2d.reshape(B, C, OUT)


def attention_reference(x_contexts, x_questions, w_sim, w_proj, b_proj):
    """Pure-JAX f32 mirror of the PyTorch forward (semantic ground truth)."""
    B, C, E = x_contexts.shape
    Q = x_questions.shape[1]
    xc_ = jnp.broadcast_to(x_contexts[:, :, None, :], (B, C, Q, E))
    xq_ = jnp.broadcast_to(x_questions[:, None, :, :], (B, C, Q, E))
    cat = jnp.concatenate([xc_, xq_, xc_ * xq_], axis=-1)         # (B,C,Q,3E)
    S = jnp.einsum('bcqk,k->bcq', cat, w_sim)                     # Linear(3E,1,no bias)
    S_row = jax.nn.softmax(S, axis=-1)
    S_col = jax.nn.softmax(S, axis=-2)
    c2q = jnp.einsum('bcq,bqe->bce', S_row, x_questions)
    q2c = jnp.einsum('bcd,bde->bce',
                     jnp.einsum('bcq,bdq->bcd', S_row, S_col), x_contexts)
    feat = jnp.concatenate(
        [x_contexts, c2q, x_contexts * c2q, x_contexts * q2c], axis=-1)
    return feat @ w_proj + b_proj


def attention_reference_mxu(x_contexts, x_questions, w_sim, w_proj, b_proj):
    """Reference using the same bf16-operand / f32-accumulate matmuls and the
    same q2c reassociation as the kernel (tight correctness check)."""
    E = x_contexts.shape[-1]
    w_c, w_q, w_m = w_sim[:E], w_sim[E:2 * E], w_sim[2 * E:]
    xc, xq = x_contexts, x_questions
    dt = MXU_DTYPE
    term_c = jnp.sum(xc * w_c, -1, keepdims=True)                 # (B, C, 1)
    term_q = jnp.sum(xq * w_q, -1, keepdims=True)                 # (B, Q, 1)
    S = (term_c + jnp.swapaxes(term_q, 1, 2)
         + jnp.einsum('bce,bqe->bcq', (xc * w_m).astype(dt), xq.astype(dt),
                      preferred_element_type=jnp.float32))
    S_row = jax.nn.softmax(S, axis=-1)
    S_colT = jnp.swapaxes(jax.nn.softmax(S, axis=1), 1, 2)
    c2q = jnp.einsum('bcq,bqe->bce', S_row.astype(dt), xq.astype(dt),
                     preferred_element_type=jnp.float32)
    t = jnp.einsum('bqc,bce->bqe', S_colT.astype(dt), xc.astype(dt),
                   preferred_element_type=jnp.float32)
    q2c = jnp.einsum('bcq,bqe->bce', S_row.astype(dt), t.astype(dt),
                     preferred_element_type=jnp.float32)
    feat = jnp.concatenate([xc, c2q, xc * c2q, xc * q2c], axis=-1)
    return jnp.einsum('bcf,fo->bco', feat.astype(dt), w_proj.astype(dt),
                      preferred_element_type=jnp.float32) + b_proj


if __name__ == "__main__":
    # Small shapes consistent with the module's forward (input_size = E = 32).
    B, C, Q, E = 2, 16, 8, 32
    OUT = 128                      # embedding_projection output dim (fixed)

    key = jax.random.PRNGKey(0)
    k_xc, k_xq, k_ws, k_wp, k_bp = jax.random.split(key, 5)

    x_contexts = jax.random.normal(k_xc, (B, C, E), dtype=jnp.float32)
    x_questions = jax.random.normal(k_xq, (B, Q, E), dtype=jnp.float32)

    # Deterministic synthetic parameters (not a checkpoint).
    # similarity: Linear(3E -> 1, bias=False): weight vector of length 3E.
    w_sim = jax.random.normal(k_ws, (3 * E,), dtype=jnp.float32) * 0.1
    # embedding_projection: Linear(4E -> 128), stored transposed as (4E, 128).
    w_proj = jax.random.normal(k_wp, (4 * E, OUT), dtype=jnp.float32) * 0.1
    b_proj = jax.random.normal(k_bp, (OUT,), dtype=jnp.float32) * 0.1

    out = attention_pallas(x_contexts, x_questions, w_sim, w_proj, b_proj)
    out = jax.block_until_ready(out)
    assert out.shape == (B, C, OUT), out.shape

    # Tight check: kernel vs reference using identical bf16-operand matmuls.
    ref_mxu = attention_reference_mxu(x_contexts, x_questions, w_sim, w_proj, b_proj)
    assert jnp.allclose(out, ref_mxu, atol=5e-3, rtol=5e-3), \
        float(jnp.max(jnp.abs(out - ref_mxu)))

    # Semantic check vs the full-f32 PyTorch-equivalent forward; tolerance
    # budgets the deliberate bf16 feeding of the MXU (f32 accumulation).
    ref = attention_reference(x_contexts, x_questions, w_sim, w_proj, b_proj)
    assert jnp.allclose(out, ref, atol=5e-2, rtol=5e-2), \
        float(jnp.max(jnp.abs(out - ref)))

    print("KERNEL_OK")
</pallas_src>

<mosaic_0001>
module attributes {stable_mosaic.version = 11 : i64} {
  func.func @attention_kernel(%arg0: i32, %arg1: memref<32x32xf32, #tpu.memory_space<vmem>>, %arg2: memref<2x8x32xf32, #tpu.memory_space<vmem>>, %arg3: memref<3x32xf32, #tpu.memory_space<vmem>>, %arg4: memref<128x128xf32, #tpu.memory_space<vmem>>, %arg5: memref<1x128xf32, #tpu.memory_space<vmem>>, %arg6: memref<32x128xf32, #tpu.memory_space<vmem>>, %arg7: memref<32x128xf32, #tpu.memory_space<vmem>>) attributes {dimension_semantics = [#tpu.dimension_semantics<parallel>], iteration_bounds = array<i64: 1>, scalar_prefetch = 0 : i64, scratch_operands = 1 : i64, tpu.core_type = #tpu.core_type<tc>, window_params = [{transform_indices = @transform_0, window_bounds = array<i64: 32, 32>}, {transform_indices = @transform_1, window_bounds = array<i64: 2, 8, 32>}, {pipeline_mode = #tpu.pipeline_mode<synchronous>, transform_indices = @transform_2, window_bounds = array<i64: 3, 32>}, {pipeline_mode = #tpu.pipeline_mode<synchronous>, transform_indices = @transform_3, window_bounds = array<i64: 128, 128>}, {pipeline_mode = #tpu.pipeline_mode<synchronous>, transform_indices = @transform_4, window_bounds = array<i64: 1, 128>}, {transform_indices = @transform_5, window_bounds = array<i64: 32, 128>}]} {
    %c0 = arith.constant 0 : index
    %c0_0 = arith.constant 0 : index
    %0 = vector.load %arg3[%c0, %c0_0] : memref<3x32xf32, #tpu.memory_space<vmem>>, vector<1x32xf32>
    %c1 = arith.constant 1 : index
    %c0_1 = arith.constant 0 : index
    %1 = vector.load %arg3[%c1, %c0_1] : memref<3x32xf32, #tpu.memory_space<vmem>>, vector<1x32xf32>
    %c2 = arith.constant 2 : index
    %c0_2 = arith.constant 0 : index
    %2 = vector.load %arg3[%c2, %c0_2] : memref<3x32xf32, #tpu.memory_space<vmem>>, vector<1x32xf32>
    %c0_3 = arith.constant 0 : index
    %c0_4 = arith.constant 0 : index
    %3 = vector.load %arg1[%c0_3, %c0_4] : memref<32x32xf32, #tpu.memory_space<vmem>>, vector<16x32xf32>
    %c0_5 = arith.constant 0 : index
    %c0_6 = arith.constant 0 : index
    %c0_7 = arith.constant 0 : index
    %4 = vector.load %arg2[%c0_5, %c0_6, %c0_7] : memref<2x8x32xf32, #tpu.memory_space<vmem>>, vector<1x8x32xf32>
    %5 = vector.shape_cast %4 : vector<1x8x32xf32> to vector<8x32xf32>
    %6 = vector.broadcast %0 : vector<1x32xf32> to vector<16x32xf32>
    %7 = arith.mulf %3, %6 : vector<16x32xf32>
    %cst = arith.constant dense<0.000000e+00> : vector<16xf32>
    %8 = vector.multi_reduction <add>, %7, %cst [1] : vector<16x32xf32> to vector<16xf32>
    %9 = vector.shape_cast %8 : vector<16xf32> to vector<16x1xf32>
    %10 = vector.broadcast %1 : vector<1x32xf32> to vector<8x32xf32>
    %11 = arith.mulf %5, %10 : vector<8x32xf32>
    %cst_8 = arith.constant dense<0.000000e+00> : vector<8xf32>
    %12 = vector.multi_reduction <add>, %11, %cst_8 [1] : vector<8x32xf32> to vector<8xf32>
    %13 = vector.shape_cast %12 : vector<8xf32> to vector<8x1xf32>
    %14 = vector.broadcast %2 : vector<1x32xf32> to vector<16x32xf32>
    %15 = arith.mulf %3, %14 : vector<16x32xf32>
    %16 = tpu.transpose %13, [1, 0] : vector<8x1xf32> -> vector<1x8xf32>
    %17 = vector.broadcast %9 : vector<16x1xf32> to vector<16x8xf32>
    %18 = vector.broadcast %16 : vector<1x8xf32> to vector<16x8xf32>
    %19 = arith.addf %17, %18 : vector<16x8xf32>
    %20 = arith.truncf %15 : vector<16x32xf32> to vector<16x32xbf16>
    %21 = tpu.transpose %5, [1, 0] : vector<8x32xf32> -> vector<32x8xf32>
    %22 = arith.truncf %21 : vector<32x8xf32> to vector<32x8xbf16>
    %cst_9 = arith.constant dense<0.000000e+00> : vector<16x8xf32>
    %23 = tpu.matmul %20, %22, %cst_9 {dimension_numbers = #tpu.dot_dimension_numbers<[1], [0], [0], [1], [0, 0, 1, 1], [], []>} : vector<16x32xbf16>, vector<32x8xbf16>, vector<16x8xf32> -> vector<16x8xf32>
    %24 = arith.addf %19, %23 : vector<16x8xf32>
    %cst_10 = arith.constant dense<0xFF800000> : vector<16xf32>
    %25 = vector.multi_reduction <maximumf>, %24, %cst_10 [1] : vector<16x8xf32> to vector<16xf32>
    %26 = vector.shape_cast %25 : vector<16xf32> to vector<16x1xf32>
    %27 = vector.broadcast %26 : vector<16x1xf32> to vector<16x8xf32>
    %28 = arith.subf %24, %27 : vector<16x8xf32>
    %29 = math.exp %28 : vector<16x8xf32>
    %cst_11 = arith.constant dense<0.000000e+00> : vector<16xf32>
    %30 = vector.multi_reduction <add>, %29, %cst_11 [1] : vector<16x8xf32> to vector<16xf32>
    %31 = vector.shape_cast %30 : vector<16xf32> to vector<16x1xf32>
    %32 = vector.broadcast %31 : vector<16x1xf32> to vector<16x8xf32>
    %33 = arith.divf %29, %32 : vector<16x8xf32>
    %cst_12 = arith.constant dense<0xFF800000> : vector<8xf32>
    %34 = vector.multi_reduction <maximumf>, %24, %cst_12 [0] : vector<16x8xf32> to vector<8xf32>
    %35 = vector.shape_cast %34 : vector<8xf32> to vector<1x8xf32>
    %36 = vector.broadcast %35 : vector<1x8xf32> to vector<16x8xf32>
    %37 = arith.subf %24, %36 : vector<16x8xf32>
    %38 = math.exp %37 : vector<16x8xf32>
    %cst_13 = arith.constant dense<0.000000e+00> : vector<8xf32>
    %39 = vector.multi_reduction <add>, %38, %cst_13 [0] : vector<16x8xf32> to vector<8xf32>
    %40 = vector.shape_cast %39 : vector<8xf32> to vector<1x8xf32>
    %41 = vector.broadcast %40 : vector<1x8xf32> to vector<16x8xf32>
    %42 = arith.divf %38, %41 : vector<16x8xf32>
    %43 = tpu.transpose %42, [1, 0] : vector<16x8xf32> -> vector<8x16xf32>
    %44 = arith.truncf %33 : vector<16x8xf32> to vector<16x8xbf16>
    %45 = arith.truncf %5 : vector<8x32xf32> to vector<8x32xbf16>
    %46 = arith.truncf %3 : vector<16x32xf32> to vector<16x32xbf16>
    %cst_14 = arith.constant dense<0.000000e+00> : vector<16x32xf32>
    %47 = tpu.matmul %44, %45, %cst_14 {dimension_numbers = #tpu.dot_dimension_numbers<[1], [0], [0], [1], [0, 0, 1, 1], [], []>} : vector<16x8xbf16>, vector<8x32xbf16>, vector<16x32xf32> -> vector<16x32xf32>
    %48 = arith.truncf %43 : vector<8x16xf32> to vector<8x16xbf16>
    %cst_15 = arith.constant dense<0.000000e+00> : vector<8x32xf32>
    %49 = tpu.matmul %48, %46, %cst_15 {dimension_numbers = #tpu.dot_dimension_numbers<[1], [0], [0], [1], [0, 0, 1, 1], [], []>} : vector<8x16xbf16>, vector<16x32xbf16>, vector<8x32xf32> -> vector<8x32xf32>
    %50 = arith.truncf %49 : vector<8x32xf32> to vector<8x32xbf16>
    %cst_16 = arith.constant dense<0.000000e+00> : vector<16x32xf32>
    %51 = tpu.matmul %44, %50, %cst_16 {dimension_numbers = #tpu.dot_dimension_numbers<[1], [0], [0], [1], [0, 0, 1, 1], [], []>} : vector<16x8xbf16>, vector<8x32xbf16>, vector<16x32xf32> -> vector<16x32xf32>
    %c0_17 = arith.constant 0 : index
    %c0_18 = arith.constant 0 : index
    %52 = vector.load %arg7[%c0_17, %c0_18] : memref<32x128xf32, #tpu.memory_space<vmem>>, vector<16x32xf32>
    tpu.vector_store %arg7[%c0_17, %c0_18], %3 {strides = array<i32>} : memref<32x128xf32, #tpu.memory_space<vmem>>, vector<16x32xf32>,
    %c0_19 = arith.constant 0 : index
    %c32 = arith.constant 32 : index
    %53 = vector.load %arg7[%c0_19, %c32] : memref<32x128xf32, #tpu.memory_space<vmem>>, vector<16x32xf32>
    tpu.vector_store %arg7[%c0_19, %c32], %47 {strides = array<i32>} : memref<32x128xf32, #tpu.memory_space<vmem>>, vector<16x32xf32>,
    %54 = arith.mulf %3, %47 : vector<16x32xf32>
    %c0_20 = arith.constant 0 : index
    %c64 = arith.constant 64 : index
    %55 = vector.load %arg7[%c0_20, %c64] : memref<32x128xf32, #tpu.memory_space<vmem>>, vector<16x32xf32>
    tpu.vector_store %arg7[%c0_20, %c64], %54 {strides = array<i32>} : memref<32x128xf32, #tpu.memory_space<vmem>>, vector<16x32xf32>,
    %56 = arith.mulf %3, %51 : vector<16x32xf32>
    %c0_21 = arith.constant 0 : index
    %c96 = arith.constant 96 : index
    %57 = vector.load %arg7[%c0_21, %c96] : memref<32x128xf32, #tpu.memory_space<vmem>>, vector<16x32xf32>
    tpu.vector_store %arg7[%c0_21, %c96], %56 {strides = array<i32>} : memref<32x128xf32, #tpu.memory_space<vmem>>, vector<16x32xf32>,
    %c16 = arith.constant 16 : index
    %c0_22 = arith.constant 0 : index
    %58 = vector.load %arg1[%c16, %c0_22] : memref<32x32xf32, #tpu.memory_space<vmem>>, vector<16x32xf32>
    %c1_23 = arith.constant 1 : index
    %c0_24 = arith.constant 0 : index
    %c0_25 = arith.constant 0 : index
    %59 = vector.load %arg2[%c1_23, %c0_24, %c0_25] : memref<2x8x32xf32, #tpu.memory_space<vmem>>, vector<1x8x32xf32>
    %60 = vector.shape_cast %59 : vector<1x8x32xf32> to vector<8x32xf32>
    %61 = vector.broadcast %0 : vector<1x32xf32> to vector<16x32xf32>
    %62 = arith.mulf %58, %61 : vector<16x32xf32>
    %cst_26 = arith.constant dense<0.000000e+00> : vector<16xf32>
    %63 = vector.multi_reduction <add>, %62, %cst_26 [1] : vector<16x32xf32> to vector<16xf32>
    %64 = vector.shape_cast %63 : vector<16xf32> to vector<16x1xf32>
    %65 = vector.broadcast %1 : vector<1x32xf32> to vector<8x32xf32>
    %66 = arith.mulf %60, %65 : vector<8x32xf32>
    %cst_27 = arith.constant dense<0.000000e+00> : vector<8xf32>
    %67 = vector.multi_reduction <add>, %66, %cst_27 [1] : vector<8x32xf32> to vector<8xf32>
    %68 = vector.shape_cast %67 : vector<8xf32> to vector<8x1xf32>
    %69 = vector.broadcast %2 : vector<1x32xf32> to vector<16x32xf32>
    %70 = arith.mulf %58, %69 : vector<16x32xf32>
    %71 = tpu.transpose %68, [1, 0] : vector<8x1xf32> -> vector<1x8xf32>
    %72 = vector.broadcast %64 : vector<16x1xf32> to vector<16x8xf32>
    %73 = vector.broadcast %71 : vector<1x8xf32> to vector<16x8xf32>
    %74 = arith.addf %72, %73 : vector<16x8xf32>
    %75 = arith.truncf %70 : vector<16x32xf32> to vector<16x32xbf16>
    %76 = tpu.transpose %60, [1, 0] : vector<8x32xf32> -> vector<32x8xf32>
    %77 = arith.truncf %76 : vector<32x8xf32> to vector<32x8xbf16>
    %cst_28 = arith.constant dense<0.000000e+00> : vector<16x8xf32>
    %78 = tpu.matmul %75, %77, %cst_28 {dimension_numbers = #tpu.dot_dimension_numbers<[1], [0], [0], [1], [0, 0, 1, 1], [], []>} : vector<16x32xbf16>, vector<32x8xbf16>, vector<16x8xf32> -> vector<16x8xf32>
    %79 = arith.addf %74, %78 : vector<16x8xf32>
    %cst_29 = arith.constant dense<0xFF800000> : vector<16xf32>
    %80 = vector.multi_reduction <maximumf>, %79, %cst_29 [1] : vector<16x8xf32> to vector<16xf32>
    %81 = vector.shape_cast %80 : vector<16xf32> to vector<16x1xf32>
    %82 = vector.broadcast %81 : vector<16x1xf32> to vector<16x8xf32>
    %83 = arith.subf %79, %82 : vector<16x8xf32>
    %84 = math.exp %83 : vector<16x8xf32>
    %cst_30 = arith.constant dense<0.000000e+00> : vector<16xf32>
    %85 = vector.multi_reduction <add>, %84, %cst_30 [1] : vector<16x8xf32> to vector<16xf32>
    %86 = vector.shape_cast %85 : vector<16xf32> to vector<16x1xf32>
    %87 = vector.broadcast %86 : vector<16x1xf32> to vector<16x8xf32>
    %88 = arith.divf %84, %87 : vector<16x8xf32>
    %cst_31 = arith.constant dense<0xFF800000> : vector<8xf32>
    %89 = vector.multi_reduction <maximumf>, %79, %cst_31 [0] : vector<16x8xf32> to vector<8xf32>
    %90 = vector.shape_cast %89 : vector<8xf32> to vector<1x8xf32>
    %91 = vector.broadcast %90 : vector<1x8xf32> to vector<16x8xf32>
    %92 = arith.subf %79, %91 : vector<16x8xf32>
    %93 = math.exp %92 : vector<16x8xf32>
    %cst_32 = arith.constant dense<0.000000e+00> : vector<8xf32>
    %94 = vector.multi_reduction <add>, %93, %cst_32 [0] : vector<16x8xf32> to vector<8xf32>
    %95 = vector.shape_cast %94 : vector<8xf32> to vector<1x8xf32>
    %96 = vector.broadcast %95 : vector<1x8xf32> to vector<16x8xf32>
    %97 = arith.divf %93, %96 : vector<16x8xf32>
    %98 = tpu.transpose %97, [1, 0] : vector<16x8xf32> -> vector<8x16xf32>
    %99 = arith.truncf %88 : vector<16x8xf32> to vector<16x8xbf16>
    %100 = arith.truncf %60 : vector<8x32xf32> to vector<8x32xbf16>
    %101 = arith.truncf %58 : vector<16x32xf32> to vector<16x32xbf16>
    %cst_33 = arith.constant dense<0.000000e+00> : vector<16x32xf32>
    %102 = tpu.matmul %99, %100, %cst_33 {dimension_numbers = #tpu.dot_dimension_numbers<[1], [0], [0], [1], [0, 0, 1, 1], [], []>} : vector<16x8xbf16>, vector<8x32xbf16>, vector<16x32xf32> -> vector<16x32xf32>
    %103 = arith.truncf %98 : vector<8x16xf32> to vector<8x16xbf16>
    %cst_34 = arith.constant dense<0.000000e+00> : vector<8x32xf32>
    %104 = tpu.matmul %103, %101, %cst_34 {dimension_numbers = #tpu.dot_dimension_numbers<[1], [0], [0], [1], [0, 0, 1, 1], [], []>} : vector<8x16xbf16>, vector<16x32xbf16>, vector<8x32xf32> -> vector<8x32xf32>
    %105 = arith.truncf %104 : vector<8x32xf32> to vector<8x32xbf16>
    %cst_35 = arith.constant dense<0.000000e+00> : vector<16x32xf32>
    %106 = tpu.matmul %99, %105, %cst_35 {dimension_numbers = #tpu.dot_dimension_numbers<[1], [0], [0], [1], [0, 0, 1, 1], [], []>} : vector<16x8xbf16>, vector<8x32xbf16>, vector<16x32xf32> -> vector<16x32xf32>
    %c16_36 = arith.constant 16 : index
    %c0_37 = arith.constant 0 : index
    %107 = vector.load %arg7[%c16_36, %c0_37] : memref<32x128xf32, #tpu.memory_space<vmem>>, vector<16x32xf32>
    tpu.vector_store %arg7[%c16_36, %c0_37], %58 {strides = array<i32>} : memref<32x128xf32, #tpu.memory_space<vmem>>, vector<16x32xf32>,
    %c16_38 = arith.constant 16 : index
    %c32_39 = arith.constant 32 : index
    %108 = vector.load %arg7[%c16_38, %c32_39] : memref<32x128xf32, #tpu.memory_space<vmem>>, vector<16x32xf32>
    tpu.vector_store %arg7[%c16_38, %c32_39], %102 {strides = array<i32>} : memref<32x128xf32, #tpu.memory_space<vmem>>, vector<16x32xf32>,
    %109 = arith.mulf %58, %102 : vector<16x32xf32>
    %c16_40 = arith.constant 16 : index
    %c64_41 = arith.constant 64 : index
    %110 = vector.load %arg7[%c16_40, %c64_41] : memref<32x128xf32, #tpu.memory_space<vmem>>, vector<16x32xf32>
    tpu.vector_store %arg7[%c16_40, %c64_41], %109 {strides = array<i32>} : memref<32x128xf32, #tpu.memory_space<vmem>>, vector<16x32xf32>,
    %111 = arith.mulf %58, %106 : vector<16x32xf32>
    %c16_42 = arith.constant 16 : index
    %c96_43 = arith.constant 96 : index
    %112 = vector.load %arg7[%c16_42, %c96_43] : memref<32x128xf32, #tpu.memory_space<vmem>>, vector<16x32xf32>
    tpu.vector_store %arg7[%c16_42, %c96_43], %111 {strides = array<i32>} : memref<32x128xf32, #tpu.memory_space<vmem>>, vector<16x32xf32>,
    %c0_44 = arith.constant 0 : index
    %c0_45 = arith.constant 0 : index
    %113 = vector.load %arg7[%c0_44, %c0_45] : memref<32x128xf32, #tpu.memory_space<vmem>>, vector<32x128xf32>
    %114 = arith.truncf %113 : vector<32x128xf32> to vector<32x128xbf16>
    %c0_46 = arith.constant 0 : index
    %c0_47 = arith.constant 0 : index
    %115 = vector.load %arg4[%c0_46, %c0_47] : memref<128x128xf32, #tpu.memory_space<vmem>>, vector<128x128xf32>
    %116 = arith.truncf %115 : vector<128x128xf32> to vector<128x128xbf16>
    %cst_48 = arith.constant dense<0.000000e+00> : vector<32x128xf32>
    %117 = tpu.matmul %114, %116, %cst_48 {dimension_numbers = #tpu.dot_dimension_numbers<[1], [0], [0], [1], [0, 0, 1, 1], [], []>} : vector<32x128xbf16>, vector<128x128xbf16>, vector<32x128xf32> -> vector<32x128xf32>
    %c0_49 = arith.constant 0 : index
    %c0_50 = arith.constant 0 : index
    %118 = vector.load %arg5[%c0_49, %c0_50] : memref<1x128xf32, #tpu.memory_space<vmem>>, vector<1x128xf32>
    %119 = vector.broadcast %118 : vector<1x128xf32> to vector<32x128xf32>
    %120 = arith.addf %117, %119 : vector<32x128xf32>
    %c0_51 = arith.constant 0 : index
    %c0_52 = arith.constant 0 : index
    %121 = vector.load %arg6[%c0_51, %c0_52] : memref<32x128xf32, #tpu.memory_space<vmem>>, vector<32x128xf32>
    tpu.vector_store %arg6[%c0_51, %c0_52], %120 {strides = array<i32>} : memref<32x128xf32, #tpu.memory_space<vmem>>, vector<32x128xf32>,
    return
  }
  func.func @transform_0(%arg0: i32) -> (i32, i32) {
    %c0_i32 = arith.constant 0 : i32
    %c0_i32_0 = arith.constant 0 : i32
    return %arg0, %c0_i32 : i32, i32
  }
  func.func @transform_1(%arg0: i32) -> (i32, i32, i32) {
    %c0_i32 = arith.constant 0 : i32
    %c0_i32_0 = arith.constant 0 : i32
    %c0_i32_1 = arith.constant 0 : i32
    return %arg0, %c0_i32, %c0_i32_0 : i32, i32, i32
  }
  func.func @transform_2(%arg0: i32) -> (i32, i32) {
    %c0_i32 = arith.constant 0 : i32
    %c0_i32_0 = arith.constant 0 : i32
    %c0_i32_1 = arith.constant 0 : i32
    return %c0_i32, %c0_i32_0 : i32, i32
  }
  func.func @transform_3(%arg0: i32) -> (i32, i32) {
    %c0_i32 = arith.constant 0 : i32
    %c0_i32_0 = arith.constant 0 : i32
    %c0_i32_1 = arith.constant 0 : i32
    return %c0_i32, %c0_i32_0 : i32, i32
  }
  func.func @transform_4(%arg0: i32) -> (i32, i32) {
    %c0_i32 = arith.constant 0 : i32
    %c0_i32_0 = arith.constant 0 : i32
    %c0_i32_1 = arith.constant 0 : i32
    return %c0_i32, %c0_i32_0 : i32, i32
  }
  func.func @transform_5(%arg0: i32) -> (i32, i32) {
    %c0_i32 = arith.constant 0 : i32
    %c0_i32_0 = arith.constant 0 : i32
    return %arg0, %c0_i32 : i32, i32
  }
}

</mosaic_0001>

<bundles_post_ra>
// kernel: attention_pallas.1
= control target key start
LH: loop header
LB: loop body
LE: loop exit
PB: predicated region body
PF: predicated region fallthrough
CT: control target
= control target key end

     0   :  { %10 = vsyncpa [#allocation4], 0  ;;  %s1444_s0 = inlined_call_operand.hbm [shape: f32[32,32], index: 0, kind: input, shape index: {}]   ;;  %s1445_s1 = inlined_call_operand.vmem [shape: f32[2,8,32], index: 1, kind: input, shape index: {}]   ;;  %s1446_s2 = inlined_call_operand.vmem [shape: f32[3,32], index: 2, kind: input, shape index: {}]   ;;  %s1447_s3 = inlined_call_operand.hbm [shape: f32[128,128], index: 3, kind: input, shape index: {}]   ;;  %s1448_s4 = inlined_call_operand.vmem [shape: f32[1,128], index: 4, kind: input, shape index: {}]   ;;  %s1449_s5 = inlined_call_operand.hbm [shape: f32[32,128], index: 5, kind: output, shape index: {}]  }
   0x1   :  { %11 = vsyncpa [#allocation7], 0 }
   0x2   :  { %12 = vsyncpa [#allocation5], 0  ;;  %s1184_s18 = smov [#allocation3]   ;;  %s1112_s22 = scalar_lea.hbm %s1444_s0, 512 }
   0x3   :  { %s18_s19 = sshll.u32 %s1184_s18, 4  ;;  %p1113_p0 = scmp.ne.s32.totalorder %s1444_s0, %s1112_s22  ;;  %s19_s19 = int_to_ptr.vmem [resolvable:$true] %s18_s19 }
   0x4   :  { %p1116_p1 = scmp.lt.u32.totalorder %s1112_s22, %s1444_s0 }
   0x6   :  { %p1118_p2 = pnand %p1116_p1, %p1113_p0 }
   0x8   :  { %1121 = shalt.err (!%p1118_p2)
}
   0x9   :  { %s1122_s27 = scalar_lea.vmem %s19_s19, 512  ;;  %p1127_p4 = scmp.lt.s32.totalorder %s19_s19, %s19_s19 }
   0xa   :  { %p1123_p3 = scmp.ne.s32.totalorder %s19_s19, %s1122_s27  ;;  %p1128_p5 = scmp.lt.s32.totalorder %s1122_s27, %s1122_s27 }
   0xc   :  { %p1129_p6 = por %p1128_p5, %p1127_p4 }
   0xe   :  { %p1130_p7 = pnand %p1129_p6, %p1123_p3 }
  0x10   :  { %1133 = shalt.err (!%p1130_p7)
}
  0x11   :  { %s1185_s28 = smov 128   ;;  %s1186_s29 = smov 8  }
  0x12   :  { %24 = dma.hbm_to_vmem [thread:$0]  %s1444_s0, 512, %s19_s19, [#allocation4], %s1185_s28, %s1185_s28, %s1186_s29  }
  0x13   :  { %s1187_s7 = smov [#allocation6]   ;;  %s1134_s11 = scalar_lea.hbm %s1447_s3, 2048 }
  0x14   :  { %s34_s8 = sshll.u32 %s1187_s7, 4  ;;  %p1135_p8 = scmp.ne.s32.totalorder %s1447_s3, %s1134_s11  ;;  %s35_s8 = int_to_ptr.vmem [resolvable:$true] %s34_s8 }
  0x15   :  { %p1138_p9 = scmp.lt.u32.totalorder %s1134_s11, %s1447_s3 }
  0x17   :  { %p1140_p10 = pnand %p1138_p9, %p1135_p8 }
  0x19   :  { %1143 = shalt.err (!%p1140_p10)
}
  0x1a   :  { %s1144_s16 = scalar_lea.vmem %s35_s8, 2048  ;;  %p1149_p12 = scmp.lt.s32.totalorder %s35_s8, %s35_s8 }
  0x1b   :  { %p1145_p11 = scmp.ne.s32.totalorder %s35_s8, %s1144_s16  ;;  %p1150_p13 = scmp.lt.s32.totalorder %s1144_s16, %s1144_s16 }
  0x1d   :  { %p1151_p0 = por %p1150_p13, %p1149_p12 }
  0x1f   :  { %p1152_p1 = pnand %p1151_p0, %p1145_p11 }
  0x21   :  { %1155 = shalt.err (!%p1152_p1)
}
  0x22   :  { %40 = dma.hbm_to_vmem [thread:$0]  %s1447_s3, 2048, %s35_s8, [#allocation7], %s1185_s28, %s1185_s28, %s1186_s29  }
  0x23   :  { %1178 = dma.done.wait [#allocation4], 512  }
  0x24   :  { %1179 = vsyncadd [#allocation4], 4294966784 }
  0x25   :  { %1180 = dma.done.wait [#allocation7], 2048  }
  0x26   :  { %1181 = vsyncadd [#allocation7], 4294965248  ;;  %v1257_v0 = vld [vmem:[%s1445_s1] sm:$0xff]  ;;  %vm62_vm0 = vcmask 261120   ;;  %v1271_v5 = vld [vmem:[#allocation3 + $0x8] sm:$0xff]  ;;  %v1188_v10 = vmov 0.0   ;;  %v115_v38 = vlaneseq }
  0x27   :  { %v962_v1 = vld [vmem:[%s1446_s2 + $0x1] ss:$0 sm:$0xff]  ;;  %v1265_v2 = vld [vmem:[%s1446_s2] ss:$0 sm:$0xff]  ;;  %122 = vxpose.xlu0.b32.start.end [1/1] (short) (narrow) %v1257_v0, 32  ;;  %424 = vst.msk [vmem:[#allocation2 + $0x8] sm:$0xff] %vm62_vm0, %v1271_v5  ;;  %1002 = vmatprep.subr.bf16.mxu0 %v1188_v10 }
  0x28   :  { %v73_v3 = vmul.f32 %v962_v1, %v1257_v0  ;;  %v1269_v4 = vld [vmem:[#allocation3] sm:$0xff]  ;;  %v61_v9 = vmul.f32 %v1265_v2, %v1271_v5  ;;  %1028 = vmatprep.subr.bf16.mxu1 %v1188_v10  ;;  %vm1189_vm1 = vmmov 0   ;;  %v1293_v12 = vld [vmem:[%s1445_s1 + $0x8] sm:$0xff]  ;;  %v1306_v26 = vld [vmem:[#allocation3 + $0x10] sm:$0xff]  ;;  %v1323_v40 = vshrl.u32 %v115_v38, 7  ;;  %s1190_s1 = smov 32  }
  0x29   :  { %v60_v6 = vmul.f32 %v1265_v2, %v1269_v4  ;;  %423 = vst.msk [vmem:[#allocation2] sm:$0xff] %vm62_vm0, %v1269_v4  ;;  %1006 = vmatprep.mubr.msk.bf16.mxu0 %vm1189_vm1, %v1188_v10  ;;  %1032 = vmatprep.mubr.msk.bf16.mxu1 %vm1189_vm1, %v1188_v10  ;;  %v474_v13 = vmul.f32 %v1293_v12, %v962_v1  ;;  %v963_v18 = vld [vmem:[%s1446_s2 + $0x2] ss:$0 sm:$0xff]  ;;  %v1308_v27 = vld [vmem:[#allocation3 + $0x18] sm:$0xff]  ;;  %817 = vst.msk [vmem:[#allocation2 + $0x10] sm:$0xff] %vm62_vm0, %v1306_v26  ;;  %vm202_vm2 = vcmask 64512  }
  0x2a   :  { %v74_v7 = vsel %vm62_vm0, %v73_v3, 0.0  ;;  %v66_v11 = vsel %vm62_vm0, %v61_v9, 0.0  ;;  %v81_v20 = vmul.f32 %v963_v18, %v1269_v4  ;;  %v82_v21 = vmul.f32 %v963_v18, %v1271_v5  ;;  %818 = vst.msk [vmem:[#allocation2 + $0x18] sm:$0xff] %vm62_vm0, %v1308_v27  ;;  %s1191_s2 = smov 64   ;;  %s1192_s27 = smov 96  }
  0x2b   :  { %75 = vadd.xlane.f32.xlu1 %v74_v7  ;;  %v63_v8 = vsel %vm62_vm0, %v60_v6, 0.0  ;;  %v475_v14 = vsel %vm62_vm0, %v474_v13, 0.0  ;;  %v478_v32 = vmul.f32 %v963_v18, %v1306_v26  ;;  %v479_v33 = vmul.f32 %v963_v18, %v1308_v27  ;;  %s1193_s7 = smov [#allocation8]  }
  0x2c   :  { %v121_v24 = vpack.c.bf16 %v82_v21, %v81_v20  ;;  %v117_v41 = vsub.s32 0, %v1323_v40  ;;  %v466_v53 = vmul.f32 %v1265_v2, %v1306_v26  ;;  %v467_v57 = vmul.f32 %v1265_v2, %v1308_v27  ;;  %s948_s8 = sshll.u32 %s1193_s7, 4  ;;  %s949_s8 = int_to_ptr.vmem [resolvable:$true] %s948_s8 }
  0x2d   :  { %v518_v36 = vpack.c.bf16 %v479_v33, %v478_v32  ;;  %v283_v38 = vpack.c.bf16 %v1257_v0, %v1257_v0  ;;  %vm288_vm3 = vcmask 1043456   ;;  %vm334_vm4 = vcmask 130048   ;;  %s1156_s9 = scalar_lea.vmem %s949_s8, 512  ;;  %p1161_p3 = scmp.lt.s32.totalorder %s949_s8, %s949_s8 }
  0x2e   :  { %v468_v56 = vsel %vm62_vm0, %v466_v53, 0.0  ;;  %v471_v58 = vsel %vm62_vm0, %v467_v57, 0.0  ;;  %vm433_vm5 = vcmask 523520   ;;  %vm446_vm6 = vcmask 785920   ;;  %p1157_p2 = scmp.ne.s32.totalorder %s949_s8, %s1156_s9  ;;  %p1162_p4 = scmp.lt.s32.totalorder %s1156_s9, %s1156_s9 }
  0x2f   :  { %64 = vadd.xlane.f32.xlu1 %v63_v8  ;;  %vm459_vm7 = vcmask 1048320  }
  0x30   :  { %p1163_p5 = por %p1162_p4, %p1161_p3 }
  0x32   :  { %p1164_p6 = pnand %p1163_p5, %p1157_p2 }
  0x33   :  { %67 = vadd.xlane.f32.xlu1 %v66_v11 }
  0x34   :  { %519 = vxpose.xlu0.b32.start.end [1/1] (short) (narrow) %v1293_v12, 32 }
  0x6d   :  { %476 = vadd.xlane.f32.xlu0 %v475_v14 }
  0xa7   :  { %v138_v15 = vpop.trf.xlu0 }
  0xab   :  { %v139_v16 = vpop.trf.xlu0 }
  0xac   :  { %v154_v17 = vpack.c.bf16 %v139_v16, %v138_v15 }
  0xae   :  { %1003 = vmatpush3.bf16.msra.mxu0 %v154_v17 }
  0xaf   :  { %v140_v19 = vpop.trf.xlu0  ;;  %1004 = vmatprep.subr.bf16.mxu0 %v1188_v10 }
  0xb3   :  { %v141_v22 = vpop.trf.xlu0 }
  0xb4   :  { %v155_v23 = vpack.c.bf16 %v141_v22, %v140_v19 }
  0xb6   :  { %1005 = vmatpush3.bf16.msra.mxu0 %v155_v23 }
  0xb7   :  { %1010 = vmatprep.subr.bf16.mxu0 %v1188_v10  ;;  %v535_v28 = vpop.trf.xlu0 }
  0xb8   :  { %v76_v25 = vpop.xlane.xlu1 %75 }
  0xb9   :  { %83 = vxpose.xlu1.b32.start.end [1/1] (short) (narrow) %v76_v25, 8  ;;  %1007 = vmatmul.mubr.msk.bf16.vlgmr.msra.gmra.mrb[0].mxu0 %vm62_vm0, %v121_v24 }
  0xba   :  { %1012 = vmatprep.mubr.msk.bf16.mxu0 %vm1189_vm1, %v1188_v10 }
  0xbb   :  { %v536_v29 = vpop.trf.xlu0 }
  0xbc   :  { %v551_v30 = vpack.c.bf16 %v536_v29, %v535_v28  ;;  %v65_v37 = vpop.xlane.xlu1 %64 }
  0xbe   :  { %1029 = vmatpush3.bf16.msra.mxu1 %v551_v30 }
  0xbf   :  { %v537_v31 = vpop.trf.xlu0  ;;  %1030 = vmatprep.subr.bf16.mxu1 %v1188_v10 }
  0xc0   :  { %v68_v39 = vpop.xlane.xlu1 %67 }
  0xc3   :  { %v538_v34 = vpop.trf.xlu0 }
  0xc4   :  { %v552_v35 = vpack.c.bf16 %v538_v34, %v537_v31 }
  0xc6   :  { %1031 = vmatpush3.bf16.msra.mxu1 %v552_v35 }
  0xc7   :  { %1042 = vmatprep.subr.bf16.mxu1 %v1188_v10 }
  0xc9   :  { %1033 = vmatmul.mubr.msk.bf16.vlgmr.msra.gmra.mrb[0].mxu1 %vm62_vm0, %v518_v36 }
  0xca   :  { %1044 = vmatprep.mubr.msk.bf16.mxu1 %vm1189_vm1, %v1188_v10 }
  0xfa   :  { %v477_v61 = vpop.xlane.xlu0 %476 }
 0x139   :  { %v99_v42 = vpop.trf.xlu1 }
 0x13a   :  { %v118_v43 = vrot.slane %v99_v42, %v117_v41 }
 0x13c   :  { %v119_v44 = vadd.f32 %v118_v43, %v65_v37  ;;  %v120_v48 = vadd.f32 %v118_v43, %v68_v39 }
 0x18c   :  { %v193_v45 = vpop.f32.mrb[0].mxu0 }
 0x18d   :  { %v200_v46 = vadd.f32 %v193_v45, %v119_v44  ;;  %v1008_v47 = vpop.f32.mrb[1].mxu0 }
 0x18e   :  { %v196_v49 = vpop.f32.mrb[2].mxu0  ;;  %v290_v47 = vsel %vm288_vm3, %v283_v38, 0 }
 0x18f   :  { %v201_v50 = vadd.f32 %v196_v49, %v120_v48  ;;  %v1009_v51 = vpop.f32.mrb[3].mxu0  ;;  %v203_v52 = vsel %vm202_vm2, %v200_v46, -inf  ;;  %1011 = vmatpush3.bf16.msra.mxu0 %v290_v47 }
 0x190   :  { %204 = vmax.xlane.f32.xlu1 %v203_v52  ;;  %1016 = vmatprep.subr.bf16.mxu0 %v1188_v10 }
 0x191   :  { %v206_v54 = vsel %vm202_vm2, %v201_v50, -inf }
 0x192   :  { %207 = vmax.xlane.f32.xlu0 %v206_v54  ;;  %v225_v55 = vmax.f32 %v203_v52, %v206_v54 }
 0x194   :  { %v226_v1 = vrot.slane %v225_v55, 4 }
 0x196   :  { %469 = vadd.xlane.f32.xlu0 %v468_v56  ;;  %v227_v3 = vmax.f32 %v225_v55, %v226_v1 }
 0x198   :  { %v228_v6 = vrot.slane %v227_v3, 2 }
 0x19a   :  { %472 = vadd.xlane.f32.xlu0 %v471_v58  ;;  %v229_v7 = vmax.f32 %v227_v3, %v228_v6 }
 0x19c   :  { %v590_v59 = vpop.f32.mrb[0].mxu1  ;;  %v230_v8 = vrot.slane %v229_v7, 1 }
 0x19d   :  { %v1034_v60 = vpop.f32.mrb[1].mxu1 }
 0x19e   :  { %v593_v62 = vpop.f32.mrb[2].mxu1  ;;  %v231_v9 = vmax.f32 %v229_v7, %v230_v8 }
 0x19f   :  { %v1035_v63 = vpop.f32.mrb[3].mxu1 }
 0x1a0   :  { %v232_v16 = vsub.f32 %v200_v46, %v231_v9  ;;  %v233_v17 = vsub.f32 %v201_v50, %v231_v9  ;;  %v680_v63 = vpack.c.bf16 %v1308_v27, %v1306_v26 }
 0x1a2   :  { %v234_v19 = vmul.f32 1.442695, %v232_v16  ;;  %v236_v20 = vmul.f32 1.442695, %v233_v17  ;;  %1043 = vmatpush3.bf16.msra.mxu1 %v680_v63 }
 0x1c7   :  { %480 = vxpose.xlu0.b32.start.end [1/1] (short) (narrow) %v477_v61, 8 }
 0x21d   :  { %v205_v11 = vpop.xlane.xlu1 %204 }
 0x21e   :  { %v209_v13 = vsub.f32 %v200_v46, %v205_v11 }
 0x21f   :  { %v208_v14 = vpop.xlane.xlu0 %207 }
 0x220   :  { %v211_v2 = vmul.f32 1.442695, %v209_v13  ;;  %v210_v15 = vsub.f32 %v201_v50, %v208_v14 }
 0x222   :  { %1084 = vpow2.f32 %v211_v2  ;;  %v213_v18 = vmul.f32 1.442695, %v210_v15 }
 0x223   :  { %v470_v32 = vpop.xlane.xlu0 %469 }
 0x224   :  { %1086 = vpow2.f32 %v213_v18 }
 0x225   :  { %1088 = vpow2.f32 %v234_v19 }
 0x226   :  { %1090 = vpow2.f32 %v236_v20 }
 0x227   :  { %v473_v35 = vpop.xlane.xlu0 %472 }
 0x22c   :  { %v1336_v21 = vpop.eup %1084 }
 0x22d   :  { %v215_v22 = vsel %vm202_vm2, %v1336_v21, 0.0 }
 0x22e   :  { %v1340_v23 = vpop.eup %1086  ;;  %216 = vadd.xlane.f32.xlu1 %v215_v22 }
 0x22f   :  { %v218_v24 = vsel %vm202_vm2, %v1340_v23, 0.0  ;;  %v1089_v25 = vpop.eup %1088 }
 0x230   :  { %v1091_v28 = vpop.eup %1090  ;;  %v238_v29 = vsel %vm202_vm2, %v1089_v25, 0.0 }
 0x231   :  { %v239_v30 = vsel %vm202_vm2, %v1091_v28, 0.0 }
 0x232   :  { %219 = vadd.xlane.f32.xlu1 %v218_v24  ;;  %v240_v31 = vadd.f32 %v239_v30, %v238_v29  ;;  %v284_v29 = vpack.c.bf16 %v1271_v5, %v1269_v4 }
 0x234   :  { %v241_v33 = vrot.slane %v240_v31, 4 }
 0x236   :  { %v242_v34 = vadd.f32 %v241_v33, %v240_v31 }
 0x238   :  { %v243_v36 = vrot.slane %v242_v34, 2 }
 0x23a   :  { %v244_v44 = vadd.f32 %v243_v36, %v242_v34 }
 0x23c   :  { %v245_v49 = vrot.slane %v244_v44, 1 }
 0x23e   :  { %v246_v50 = vadd.f32 %v245_v49, %v244_v44 }
 0x240   :  { %1092 = vrcp.f32 %v246_v50 }
 0x247   :  { %v496_v37 = vpop.trf.xlu0 }
 0x248   :  { %v515_v39 = vrot.slane %v496_v37, %v117_v41 }
 0x24a   :  { %v516_v42 = vadd.f32 %v515_v39, %v470_v32  ;;  %v517_v43 = vadd.f32 %v515_v39, %v473_v35  ;;  %v1093_v60 = vpop.eup %1092 }
 0x24b   :  { %v248_v61 = vmul.f32 %v1093_v60, %v1089_v25 }
 0x24c   :  { %v1350_v45 = vadd.f32 %v590_v59, %v516_v42  ;;  %v1352_v46 = vadd.f32 %v593_v62, %v517_v43  ;;  %v249_v62 = vmul.f32 %v1093_v60, %v1091_v28 }
 0x24e   :  { %v599_v48 = vsel %vm202_vm2, %v1350_v45, -inf  ;;  %v602_v0 = vsel %vm202_vm2, %v1352_v46, -inf }
 0x24f   :  { %v621_v40 = vmax.f32 %v599_v48, %v602_v0 }
 0x251   :  { %v622_v41 = vrot.slane %v621_v40, 4 }
 0x253   :  { %v623_v51 = vmax.f32 %v621_v40, %v622_v41  ;;  %v679_v41 = vpack.c.bf16 %v1293_v12, %v1293_v12 }
 0x255   :  { %v624_v52 = vrot.slane %v623_v51, 2 }
 0x257   :  { %v625_v53 = vmax.f32 %v623_v51, %v624_v52 }
 0x259   :  { %v626_v54 = vrot.slane %v625_v53, 1 }
 0x25b   :  { %v627_v55 = vmax.f32 %v625_v53, %v626_v54 }
 0x25d   :  { %v628_v56 = vsub.f32 %v1350_v45, %v627_v55  ;;  %v629_v57 = vsub.f32 %v1352_v46, %v627_v55  ;;  %v685_v55 = vsel %vm288_vm3, %v679_v41, 0 }
 0x25f   :  { %v630_v58 = vmul.f32 1.442695, %v628_v56  ;;  %v632_v59 = vmul.f32 1.442695, %v629_v57 }
 0x261   :  { %1094 = vpow2.f32 %v630_v58 }
 0x262   :  { %1096 = vpow2.f32 %v632_v59 }
 0x265   :  { %250 = vxpose.xlu1.b32.start [1/2] (short) (narrow) %v248_v61, 8 }
 0x269   :  { %251 = vxpose.xlu1.b32.end [2/2] (short) (narrow) %v249_v62, 8 }
 0x26b   :  { %v1095_v1 = vpop.eup %1094 }
 0x26c   :  { %v1097_v3 = vpop.eup %1096  ;;  %v634_v6 = vsel %vm202_vm2, %v1095_v1, 0.0 }
 0x26d   :  { %v635_v7 = vsel %vm202_vm2, %v1097_v3, 0.0 }
 0x26e   :  { %v636_v8 = vadd.f32 %v635_v7, %v634_v6 }
 0x270   :  { %v637_v9 = vrot.slane %v636_v8, 4 }
 0x272   :  { %v638_v11 = vadd.f32 %v637_v9, %v636_v8 }
 0x274   :  { %v639_v13 = vrot.slane %v638_v11, 2 }
 0x276   :  { %v640_v14 = vadd.f32 %v639_v13, %v638_v11 }
 0x278   :  { %v641_v2 = vrot.slane %v640_v14, 1 }
 0x27a   :  { %v642_v15 = vadd.f32 %v641_v2, %v640_v14 }
 0x27c   :  { %1098 = vrcp.f32 %v642_v15 }
 0x286   :  { %v1099_v16 = vpop.eup %1098 }
 0x287   :  { %v644_v17 = vmul.f32 %v1099_v16, %v1095_v1  ;;  %v645_v18 = vmul.f32 %v1099_v16, %v1097_v3  ;;  %v859_v16 = vld [vmem:[#allocation6] sm:$0xff] }
 0x289   :  { %646 = vxpose.xlu0.b32.start [1/2] (short) (narrow) %v644_v17, 8  ;;  %v860_v17 = vld [vmem:[#allocation6 + $0x8] sm:$0xff] }
 0x28d   :  { %647 = vxpose.xlu0.b32.end [2/2] (short) (narrow) %v645_v18, 8  ;;  %v861_v18 = vld [vmem:[#allocation6 + $0x10] sm:$0xff] }
 0x290   :  { %603 = vmax.xlane.f32.xlu1 %v602_v0 }
 0x2ba   :  { %600 = vmax.xlane.f32.xlu0 %v599_v48 }
 0x2bb   :  { %v217_v19 = vpop.xlane.xlu1 %216 }
 0x2bc   :  { %1100 = vrcp.f32 %v217_v19 }
 0x2bf   :  { %v220_v20 = vpop.xlane.xlu1 %219 }
 0x2c0   :  { %1102 = vrcp.f32 %v220_v20 }
 0x2c6   :  { %v1101_v22 = vpop.eup %1100 }
 0x2c7   :  { %v222_v25 = vmul.f32 %v1101_v22, %v1336_v21  ;;  %v875_v22 = vpack.c.bf16 %v860_v17, %v859_v16 }
 0x2c9   :  { %1054 = vmatprep.subr.bf16.mxu1 %v875_v22 }
 0x2ca   :  { %v1103_v24 = vpop.eup %1102 }
 0x2cb   :  { %v224_v28 = vmul.f32 %v1103_v24, %v1340_v23  ;;  %v862_v24 = vld [vmem:[#allocation6 + $0x18] sm:$0xff] }
 0x2cd   :  { %v282_v30 = vpack.c.bf16 %v224_v28, %v222_v25  ;;  %v876_v25 = vpack.c.bf16 %v862_v24, %v861_v18  ;;  %v863_v28 = vld [vmem:[#allocation6 + $0x20] sm:$0xff] }
 0x2cf   :  { %1013 = vmatmul.mubr.msk.bf16.vlgmr.msra.gmra.mrb[4].mxu0 %vm202_vm2, %v282_v30 }
 0x2d0   :  { %1017 = vmatpush3.bf16.msra.mxu0 %v284_v29  ;;  %1018 = vmatprep.mubr.msk.bf16.mxu0 %vm1189_vm1, %v1188_v10  ;;  %v864_v29 = vld [vmem:[#allocation6 + $0x28] sm:$0xff] }
 0x2d1   :  { %1022 = vmatprep.subr.bf16.mxu0 %v1188_v10 }
 0x2e5   :  { %v266_v31 = vpop.trf.xlu1 }
 0x2e6   :  { %v333_v32 = vpack.c.bf16 %v266_v31, %v266_v31 }
 0x2e8   :  { %1019 = vmatmul.mubr.msk.bf16.vlgmr.msra.gmra.mrb[8].mxu0 %vm334_vm4, %v333_v32  ;;  %v867_v32 = vld [vmem:[#allocation6 + $0x40] sm:$0xff] }
 0x2e9   :  { %1024 = vmatprep.mubr.msk.bf16.mxu0 %vm1189_vm1, %v1188_v10 }
 0x309   :  { %v662_v21 = vpop.trf.xlu0 }
 0x30a   :  { %v728_v23 = vpack.c.bf16 %v662_v21, %v662_v21  ;;  %v868_v21 = vld [vmem:[#allocation6 + $0x48] sm:$0xff] }
 0x30c   :  { %1045 = vmatmul.mubr.msk.bf16.vlgmr.msra.gmra.mrb[4].mxu1 %vm334_vm4, %v728_v23  ;;  %v879_v23 = vpack.c.bf16 %v868_v21, %v867_v32 }
 0x30d   :  { %1055 = vmatpush3.bf16.msra.mxu1 %v875_v22 }
 0x30e   :  { %1056 = vmatprep.subr.bf16.mxu1 %v876_v25 }
 0x311   :  { %1057 = vmatpush3.bf16.msra.mxu1 %v876_v25 }
 0x31d   :  { %v604_v33 = vpop.xlane.xlu1 %603 }
 0x31e   :  { %v606_v34 = vsub.f32 %v1352_v46, %v604_v33  ;;  %v869_v33 = vld [vmem:[#allocation6 + $0x50] sm:$0xff] }
 0x320   :  { %v609_v37 = vmul.f32 1.442695, %v606_v34  ;;  %v870_v34 = vld [vmem:[#allocation6 + $0x58] sm:$0xff] }
 0x347   :  { %v601_v35 = vpop.xlane.xlu0 %600 }
 0x348   :  { %v605_v36 = vsub.f32 %v1350_v45, %v601_v35  ;;  %v880_v35 = vpack.c.bf16 %v870_v34, %v869_v33 }
 0x34a   :  { %v607_v38 = vmul.f32 1.442695, %v605_v36  ;;  %v871_v36 = vld [vmem:[#allocation6 + $0x60] sm:$0xff] }
 0x34c   :  { %1104 = vpow2.f32 %v607_v38 }
 0x34d   :  { %1106 = vpow2.f32 %v609_v37  ;;  %v872_v37 = vld [vmem:[#allocation6 + $0x68] sm:$0xff] }
 0x356   :  { %v1105_v39 = vpop.eup %1104 }
 0x357   :  { %v611_v42 = vsel %vm202_vm2, %v1105_v39, 0.0  ;;  %v1107_v43 = vpop.eup %1106 }
 0x358   :  { %612 = vadd.xlane.f32.xlu0 %v611_v42  ;;  %v614_v44 = vsel %vm202_vm2, %v1107_v43, 0.0  ;;  %v873_v42 = vld [vmem:[#allocation6 + $0x70] sm:$0xff] }
 0x35c   :  { %615 = vadd.xlane.f32.xlu0 %v614_v44 }
 0x3a2   :  { %v326_v47 = vpop.f32.mrb[4].mxu0 }
 0x3a3   :  { %v1014_v48 = vpop.f32.mrb[5].mxu0  ;;  %427 = vrot.lane.b32.xlu0 %v326_v47, %s1190_s1  ;;  %v436_v45 = vmul.f32 %v326_v47, %v1269_v4 }
 0x3a4   :  { %v329_v46 = vpop.f32.mrb[6].mxu0 }
 0x3a5   :  { %v1015_v0 = vpop.f32.mrb[7].mxu0  ;;  %429 = vrot.lane.b32.xlu1 %v329_v46, %s1190_s1  ;;  %v437_v49 = vmul.f32 %v329_v46, %v1271_v5 }
 0x3a7   :  { %440 = vrot.lane.b32.xlu0 %v436_v45, %s1191_s2 }
 0x3ab   :  { %442 = vrot.lane.b32.xlu0 %v437_v49, %s1191_s2 }
 0x3bb   :  { %v372_v40 = vpop.f32.mrb[8].mxu0 }
 0x3bc   :  { %v378_v50 = vpack.c.bf16 %v372_v40, %v372_v40  ;;  %v1020_v51 = vpop.f32.mrb[9].mxu0 }
 0x3bd   :  { %v375_v52 = vpop.f32.mrb[10].mxu0 }
 0x3be   :  { %v380_v53 = vsel %vm288_vm3, %v378_v50, 0  ;;  %v1021_v54 = vpop.f32.mrb[11].mxu0 }
 0x3bf   :  { %1023 = vmatpush3.bf16.msra.mxu0 %v380_v53 }
 0x3c0   :  { %1036 = vmatprep.subr.bf16.mxu0 %v1188_v10 }
 0x3c2   :  { %1025 = vmatmul.mubr.msk.bf16.vlgmr.msra.gmra.mrb[12].mxu0 %vm202_vm2, %v282_v30  ;;  %v865_v30 = vld [vmem:[#allocation6 + $0x30] sm:$0xff] }
 0x3c3   :  { %1037 = vmatpush3.bf16.msra.mxu0 %v685_v55  ;;  %1038 = vmatprep.mubr.msk.bf16.mxu0 %vm1189_vm1, %v1188_v10 }
 0x3c4   :  { %1048 = vmatprep.subr.bf16.mxu0 %v1188_v10 }
 0x3df   :  { %v766_v12 = vpop.f32.mrb[4].mxu1 }
 0x3e0   :  { %v1046_v56 = vpop.f32.mrb[5].mxu1  ;;  %v772_v62 = vpack.c.bf16 %v766_v12, %v766_v12 }
 0x3e1   :  { %v769_v57 = vpop.f32.mrb[6].mxu1 }
 0x3e2   :  { %v1047_v58 = vpop.f32.mrb[7].mxu1  ;;  %v774_v6 = vsel %vm288_vm3, %v772_v62, 0 }
 0x3e5   :  { %v613_v59 = vpop.xlane.xlu0 %612 }
 0x3e6   :  { %1108 = vrcp.f32 %v613_v59 }
 0x3e9   :  { %v616_v60 = vpop.xlane.xlu0 %615 }
 0x3ea   :  { %1110 = vrcp.f32 %v616_v60 }
 0x3f0   :  { %v1109_v61 = vpop.eup %1108 }
 0x3f1   :  { %v618_v1 = vmul.f32 %v1109_v61, %v1105_v39  ;;  %v881_v39 = vpack.c.bf16 %v872_v37, %v871_v36 }
 0x3f4   :  { %v1111_v63 = vpop.eup %1110 }
 0x3f5   :  { %v620_v3 = vmul.f32 %v1111_v63, %v1107_v43  ;;  %v874_v43 = vld [vmem:[#allocation6 + $0x78] sm:$0xff] }
 0x3f6   :  { %v882_v47 = vpack.c.bf16 %v874_v43, %v873_v42 }
 0x3f7   :  { %v678_v7 = vpack.c.bf16 %v620_v3, %v618_v1  ;;  %v973_v1 = vld [vmem:[%s1448_s4] ss:$0 sm:$0xff] }
 0x3f9   :  { %1039 = vmatmul.mubr.msk.bf16.vlgmr.msra.gmra.mrb[16].mxu0 %vm202_vm2, %v678_v7 }
 0x3fa   :  { %1049 = vmatpush3.bf16.msra.mxu0 %v774_v6  ;;  %1050 = vmatprep.mubr.msk.bf16.mxu0 %vm1189_vm1, %v1188_v10 }
 0x401   :  { %1051 = vmatmul.mubr.msk.bf16.vlgmr.msra.gmra.mrb[20].mxu0 %vm202_vm2, %v678_v7 }
 0x415   :  { %v428_v8 = vpop.permute.xlu0 %427 }
 0x416   :  { %434 = vst.msk [vmem:[#allocation2] sm:$0xff] %vm433_vm5, %v428_v8 }
 0x417   :  { %v430_v9 = vpop.permute.xlu1 %429 }
 0x418   :  { %435 = vst.msk [vmem:[#allocation2 + $0x8] sm:$0xff] %vm433_vm5, %v430_v9 }
 0x419   :  { %v441_v11 = vpop.permute.xlu0 %440 }
 0x41a   :  { %447 = vst.msk [vmem:[#allocation2] sm:$0xff] %vm446_vm6, %v441_v11 }
 0x41d   :  { %v443_v13 = vpop.permute.xlu0 %442 }
 0x41e   :  { %448 = vst.msk [vmem:[#allocation2 + $0x8] sm:$0xff] %vm446_vm6, %v443_v13 }
 0x495   :  { %v416_v14 = vpop.f32.mrb[12].mxu0 }
 0x496   :  { %v449_v2 = vmul.f32 %v416_v14, %v1269_v4  ;;  %v1026_v10 = vpop.f32.mrb[13].mxu0  ;;  %v877_v4 = vpack.c.bf16 %v864_v29, %v863_v28 }
 0x497   :  { %v419_v15 = vpop.f32.mrb[14].mxu0 }
 0x498   :  { %v450_v19 = vmul.f32 %v419_v15, %v1271_v5  ;;  %453 = vrot.lane.b32.xlu1 %v449_v2, %s1192_s27  ;;  %v1027_v20 = vpop.f32.mrb[15].mxu0  ;;  %1058 = vmatprep.subr.bf16.mxu1 %v877_v4  ;;  %v866_v5 = vld [vmem:[#allocation6 + $0x38] sm:$0xff] }
 0x499   :  { %1059 = vmatpush3.bf16.msra.mxu1 %v877_v4  ;;  %v878_v31 = vpack.c.bf16 %v866_v5, %v865_v30 }
 0x49a   :  { %455 = vrot.lane.b32.xlu0 %v450_v19, %s1192_s27 }
 0x49b   :  { %1060 = vmatprep.subr.bf16.mxu1 %v878_v31 }
 0x49d   :  { %1061 = vmatpush3.bf16.msra.mxu1 %v878_v31 }
 0x49e   :  { %1062 = vmatprep.subr.bf16.mxu1 %v879_v23 }
 0x4a1   :  { %1063 = vmatpush3.bf16.msra.mxu1 %v879_v23 }
 0x4a2   :  { %1064 = vmatprep.subr.bf16.mxu1 %v880_v35 }
 0x4a5   :  { %1065 = vmatpush3.bf16.msra.mxu1 %v880_v35 }
 0x4a6   :  { %1066 = vmatprep.subr.bf16.mxu1 %v881_v39 }
 0x4a9   :  { %1067 = vmatpush3.bf16.msra.mxu1 %v881_v39 }
 0x4aa   :  { %1068 = vmatprep.subr.bf16.mxu1 %v882_v47 }
 0x4ad   :  { %1069 = vmatpush3.bf16.msra.mxu1 %v882_v47 }
 0x4cc   :  { %v721_v38 = vpop.f32.mrb[16].mxu0 }
 0x4cd   :  { %821 = vrot.lane.b32.xlu1 %v721_v38, %s1190_s1  ;;  %v1040_v44 = vpop.f32.mrb[17].mxu0  ;;  %v829_v46 = vmul.f32 %v721_v38, %v1306_v26 }
 0x4ce   :  { %v724_v48 = vpop.f32.mrb[18].mxu0 }
 0x4cf   :  { %823 = vrot.lane.b32.xlu0 %v724_v48, %s1190_s1  ;;  %v1041_v45 = vpop.f32.mrb[19].mxu0  ;;  %v830_v0 = vmul.f32 %v724_v48, %v1308_v27 }
 0x4d1   :  { %833 = vrot.lane.b32.xlu1 %v829_v46, %s1191_s2 }
 0x4d3   :  { %835 = vrot.lane.b32.xlu0 %v830_v0, %s1191_s2 }
 0x4d4   :  { %v810_v49 = vpop.f32.mrb[20].mxu0 }
 0x4d5   :  { %v841_v40 = vmul.f32 %v810_v49, %v1306_v26  ;;  %v1052_v41 = vpop.f32.mrb[21].mxu0 }
 0x4d6   :  { %v813_v50 = vpop.f32.mrb[22].mxu0 }
 0x4d7   :  { %v842_v51 = vmul.f32 %v813_v50, %v1308_v27  ;;  %845 = vrot.lane.b32.xlu1 %v841_v40, %s1192_s27  ;;  %v1053_v52 = vpop.f32.mrb[23].mxu0 }
 0x4d9   :  { %847 = vrot.lane.b32.xlu0 %v842_v51, %s1192_s27 }
 0x50a   :  { %v454_v53 = vpop.permute.xlu1 %453 }
 0x50b   :  { %460 = vst.msk [vmem:[#allocation2] sm:$0xff] %vm459_vm7, %v454_v53 }
 0x50c   :  { %v456_v54 = vpop.permute.xlu0 %455 }
 0x50d   :  { %461 = vst.msk [vmem:[#allocation2 + $0x8] sm:$0xff] %vm459_vm7, %v456_v54 }
 0x512   :  { %v853_v55 = vld [vmem:[#allocation2] sm:$0xff] }
 0x514   :  { %v854_v12 = vld [vmem:[#allocation2 + $0x8] sm:$0xff] }
 0x515   :  { %v857_v56 = vpack.c.bf16 %v854_v12, %v853_v55 }
 0x517   :  { %1070 = vmatprep.mubr.bf16.mxu1 %v857_v56 }
 0x53f   :  { %v822_v26 = vpop.permute.xlu1 %821 }
 0x540   :  { %827 = vst.msk [vmem:[#allocation2 + $0x10] sm:$0xff] %vm433_vm5, %v822_v26 }
 0x541   :  { %v824_v27 = vpop.permute.xlu0 %823 }
 0x542   :  { %828 = vst.msk [vmem:[#allocation2 + $0x18] sm:$0xff] %vm433_vm5, %v824_v27 }
 0x543   :  { %v834_v57 = vpop.permute.xlu1 %833 }
 0x544   :  { %839 = vst.msk [vmem:[#allocation2 + $0x10] sm:$0xff] %vm446_vm6, %v834_v57 }
 0x545   :  { %v836_v58 = vpop.permute.xlu0 %835 }
 0x546   :  { %840 = vst.msk [vmem:[#allocation2 + $0x18] sm:$0xff] %vm446_vm6, %v836_v58 }
 0x549   :  { %v846_v59 = vpop.permute.xlu1 %845 }
 0x54a   :  { %851 = vst.msk [vmem:[#allocation2 + $0x10] sm:$0xff] %vm459_vm7, %v846_v59 }
 0x54b   :  { %v848_v60 = vpop.permute.xlu0 %847 }
 0x54c   :  { %852 = vst.msk [vmem:[#allocation2 + $0x18] sm:$0xff] %vm459_vm7, %v848_v60 }
 0x551   :  { %v855_v61 = vld [vmem:[#allocation2 + $0x10] sm:$0xff] }
 0x553   :  { %v856_v62 = vld [vmem:[#allocation2 + $0x18] sm:$0xff] }
 0x554   :  { %v858_v63 = vpack.c.bf16 %v856_v62, %v855_v61 }
 0x556   :  { %1071 = vmatmul.mubr.bf16.vlgmr.msra.gmra.mrb[8].mxu1 %v858_v63 }
 0x629   :  { %v1072_v3 = vpop.f32.mrb[8].mxu1 }
 0x62a   :  { %v933_v6 = vadd.f32 %v1072_v3, %v973_v1  ;;  %v924_v7 = vpop.f32.mrb[9].mxu1 }
 0x62b   :  { %v925_v8 = vadd.f32 %v973_v1, %v924_v7  ;;  %v1073_v9 = vpop.f32.mrb[10].mxu1 }
 0x62c   :  { %941 = vst [vmem:[#allocation8 + $0x10] sm:$0xff] %v933_v6  ;;  %v936_v11 = vadd.f32 %v1073_v9, %v973_v1  ;;  %v927_v13 = vpop.f32.mrb[11].mxu1 }
 0x62d   :  { %939 = vst [vmem:[#allocation8] sm:$0xff] %v925_v8  ;;  %v928_v14 = vadd.f32 %v973_v1, %v927_v13 }
 0x62e   :  { %942 = vst [vmem:[#allocation8 + $0x18] sm:$0xff] %v936_v11 }
 0x62f   :  { %940 = vst [vmem:[#allocation8 + $0x8] sm:$0xff] %v928_v14 }
 0x630   :  { %1167 = shalt.err (!%p1164_p6)
}
 0x631   :  { %s1168_s11 = scalar_lea.hbm %s1449_s5, 512 }
 0x632   :  { %p1169_p7 = scmp.ne.s32.totalorder %s1449_s5, %s1168_s11  ;;  %p1172_p8 = scmp.lt.u32.totalorder %s1168_s11, %s1449_s5 }
 0x634   :  { %p1174_p9 = pnand %p1172_p8, %p1169_p7 }
 0x636   :  { %1177 = shalt.err (!%p1174_p9)
}
 0x637   :  { %954 = dma.vmem_to_hbm [thread:$0]  %s949_s8, 512, %s1449_s5, [#allocation5], %s1185_s28, %s1185_s28, %s1186_s29  }
 0x638   :  { %1182 = dma.done.wait [#allocation5], 512  }
 0x639   :  { %1183 = vsyncadd [#allocation5], 4294966784 }
 0x63a   :  { %958 = vsyncpa [#allocation4], 1 }
 0x63b   :  { %959 = vsyncpa [#allocation7], 1 }
 0x63c   :  { %960 = vsyncpa [#allocation5], 1 }

</bundles_post_ra>
